<compile_context>
chip_gen: v7x
topology: tpu7x:2x2x1
jax: 0.10.0
libtpu: 0.0.40
codegen_flags: <defaults>
</compile_context>

<pallas_src>
import math

import jax
import jax.numpy as jnp
from jax.experimental import pallas as pl
from jax.experimental.pallas import tpu as pltpu


# ---------------------------------------------------------------------------
# Kernels
# ---------------------------------------------------------------------------
def _self_output_resident_kernel(x_ref, w_ref, b_ref, res_ref, o_ref):
    # x_ref:   [TM, K]      activation row tile (K = padded hidden)
    # w_ref:   [K, N]       full pre-transposed weight (VMEM-resident, DMA'd once)
    # b_ref:   [1, N]       full bias (VMEM-resident)
    # res_ref: [TM, N]      residual row tile
    # o_ref:   [TM, N]      output row tile (lane-dense)
    y = jnp.dot(x_ref[...], w_ref[...], preferred_element_type=jnp.float32)
    y = y + b_ref[...].astype(jnp.float32) + res_ref[...].astype(jnp.float32)
    # TODO(synk): dropout is identity here (inference semantics); training-mode
    # dropout would need pltpu.prng_seed / pltpu.prng_random_bits + 1/(1-p) scale.
    o_ref[...] = y.astype(o_ref.dtype)


def _self_output_tiled_kernel(x_ref, w_ref, b_ref, res_ref, o_ref, acc_ref):
    # Grid = (M tiles, N tiles, K tiles); K is the minor-most reduction axis.
    # x_ref: [TM, TK], w_ref: [TK, TN] (pre-transposed), b_ref: [1, TN],
    # res_ref/o_ref: [TM, TN], acc_ref: f32 [TM, TN] scratch.
    k = pl.program_id(2)

    @pl.when(k == 0)
    def _():
        acc_ref[...] = jnp.zeros_like(acc_ref)

    acc_ref[...] += jnp.dot(x_ref[...], w_ref[...],
                            preferred_element_type=jnp.float32)

    @pl.when(k == pl.num_programs(2) - 1)
    def _():
        y = (acc_ref[...]
             + b_ref[...].astype(jnp.float32)
             + res_ref[...].astype(jnp.float32))
        o_ref[...] = y.astype(o_ref.dtype)


# ---------------------------------------------------------------------------
# Helpers
# ---------------------------------------------------------------------------
def _round_up(x, m):
    return ((x + m - 1) // m) * m


def _largest_tile(total, cap, step=128):
    """Largest multiple-of-`step` divisor of `total` that is <= cap.

    `total` is already a multiple of `step`, so the result always divides it
    (no silent fallback to 128 that doubles the number of grid steps).
    """
    best = step
    d = step
    while d <= min(total, cap):
        if total % d == 0:
            best = d
        d += step
    return best


def _vmem_budget():
    """Per-generation VMEM budget: ~0.75 of physical capacity (headroom for
    Mosaic internal scratch / semaphores / double buffers)."""
    try:
        capacity = int(pltpu.get_tpu_info().vmem_capacity_bytes)
    except Exception:
        capacity = 64 << 20  # conservative (v7x-sized); safe on every generation
    return int(0.75 * capacity)


# ---------------------------------------------------------------------------
# Wrapper
# ---------------------------------------------------------------------------
def qt_self_output(hidden_states, input_tensor, weight, bias,
                   *, tm=512, tn=512, tk=512):
    """hidden_states, input_tensor: [..., H]; weight: [H_out, H_in] (torch
    layout); bias: [H].  Returns dense(hidden_states) + input_tensor."""
    orig_shape = hidden_states.shape
    H = orig_shape[-1]
    M = math.prod(orig_shape[:-1])
    dtype = hidden_states.dtype
    itemsize = jnp.dtype(dtype).itemsize

    # ---- lane-dim padding only (K/N axis).  No M padding: the grid uses
    #      pl.cdiv and the pipeline masks the ragged last row block. ----------
    H_pad = _round_up(H, 128)

    x2 = hidden_states.reshape(M, H)
    r2 = input_tensor.reshape(M, H)
    wt = weight.T                       # [H_in, H_out] -> plain x @ Wt, no vxpose
    b2 = bias.reshape(1, H)
    if H_pad != H:
        x2 = jnp.pad(x2, ((0, 0), (0, H_pad - H)))
        r2 = jnp.pad(r2, ((0, 0), (0, H_pad - H)))
        wt = jnp.pad(wt, ((0, H_pad - H), (0, H_pad - H)))
        b2 = jnp.pad(b2, ((0, 0), (0, H_pad - H)))

    budget = _vmem_budget()
    headroom = 4 << 20

    # ---- row-tile candidates (multiple of 8, <= M rounded up) ---------------
    M8 = max(8, _round_up(M, 8))
    tm_cap = max(8, min(_round_up(tm, 8), M8))
    tm_candidates = [tm_cap] + [c for c in (512, 256, 128, 64, 32, 16, 8)
                                if c < tm_cap]

    # ---- fast path: fully VMEM-resident weight (fetched once) ---------------
    def _resident_need(row_tile):
        return itemsize * (
            2 * H_pad * H_pad          # weight (constant index -> DMA'd once)
            + 2 * H_pad                # bias
            + 2 * row_tile * H_pad     # x tile (double-buffered)
            + 2 * row_tile * H_pad     # residual tile
            + 2 * row_tile * H_pad     # output tile
        ) + headroom

    TM_res = None
    for cand in tm_candidates:
        if _resident_need(cand) <= budget:
            TM_res = cand
            break

    if TM_res is not None:
        TM = TM_res
        grid = (pl.cdiv(M, TM),)
        vmem_need = _resident_need(TM)
        cost = pl.CostEstimate(
            flops=2 * M * H_pad * H_pad,
            transcendentals=0,
            bytes_accessed=itemsize * (3 * M * H_pad + H_pad * H_pad + H_pad),
        )
        out = pl.pallas_call(
            _self_output_resident_kernel,
            out_shape=jax.ShapeDtypeStruct((M, H_pad), dtype),
            grid_spec=pltpu.PrefetchScalarGridSpec(
                num_scalar_prefetch=0,
                grid=grid,
                in_specs=[
                    pl.BlockSpec((TM, H_pad), lambda i: (i, 0)),       # x rows
                    pl.BlockSpec((H_pad, H_pad), lambda i: (0, 0)),    # resident W^T
                    pl.BlockSpec((1, H_pad), lambda i: (0, 0)),        # resident bias
                    pl.BlockSpec((TM, H_pad), lambda i: (i, 0)),       # residual rows
                ],
                out_specs=pl.BlockSpec((TM, H_pad), lambda i: (i, 0)),
            ),
            compiler_params=pltpu.CompilerParams(
                dimension_semantics=("parallel",),
                vmem_limit_bytes=int(min(budget, max(vmem_need, 32 << 20))),
            ),
            cost_estimate=cost,
        )(x2, wt, b2, r2)
    else:
        # ---- large-H fallback: (M, N, K) tiling with f32 accumulator --------
        TN = _largest_tile(H_pad, tn)
        TK = _largest_tile(H_pad, tk)

        def _tiled_need(row_tile):
            return itemsize * (
                2 * row_tile * TK      # x tile
                + 2 * TK * TN          # weight tile
                + 2 * TN               # bias tile
                + 2 * row_tile * TN    # residual tile
                + 2 * row_tile * TN    # output tile
            ) + 4 * row_tile * TN + headroom  # f32 accumulator scratch

        TM = tm_candidates[-1]
        for cand in tm_candidates:
            if _tiled_need(cand) <= budget:
                TM = cand
                break

        n_m = pl.cdiv(M, TM)
        n_n = H_pad // TN
        n_k = H_pad // TK
        grid = (n_m, n_n, n_k)
        vmem_need = _tiled_need(TM)
        cost = pl.CostEstimate(
            flops=2 * M * H_pad * H_pad,
            transcendentals=0,
            bytes_accessed=itemsize * (n_n * M * H_pad       # x re-streamed per N tile
                                       + n_m * H_pad * H_pad  # W re-streamed per M tile
                                       + 2 * M * H_pad + H_pad),
        )
        out = pl.pallas_call(
            _self_output_tiled_kernel,
            out_shape=jax.ShapeDtypeStruct((M, H_pad), dtype),
            grid_spec=pltpu.PrefetchScalarGridSpec(
                num_scalar_prefetch=0,
                grid=grid,
                in_specs=[
                    pl.BlockSpec((TM, TK), lambda i, j, k: (i, k)),   # x
                    pl.BlockSpec((TK, TN), lambda i, j, k: (k, j)),   # W^T
                    pl.BlockSpec((1, TN),  lambda i, j, k: (0, j)),   # bias
                    pl.BlockSpec((TM, TN), lambda i, j, k: (i, j)),   # residual
                ],
                out_specs=pl.BlockSpec((TM, TN), lambda i, j, k: (i, j)),
                scratch_shapes=[pltpu.VMEM((TM, TN), jnp.float32)],
            ),
            compiler_params=pltpu.CompilerParams(
                dimension_semantics=("parallel", "parallel", "arbitrary"),
                vmem_limit_bytes=int(min(budget, max(vmem_need, 32 << 20))),
            ),
            cost_estimate=cost,
        )(x2, wt, b2, r2)

    if H_pad != H:
        out = out[:, :H]
    return out.reshape(orig_shape)


# ---------------------------------------------------------------------------
# Demo / correctness check
# ---------------------------------------------------------------------------
if __name__ == "__main__":
    # Small, module-consistent shapes: batch=2, seq=8, hidden=32.
    B, S, H = 2, 8, 32
    key = jax.random.PRNGKey(0)
    k_x, k_r, k_w, k_b = jax.random.split(key, 4)

    hidden_states = jax.random.normal(k_x, (B, S, H), dtype=jnp.float32)
    input_tensor = jax.random.normal(k_r, (B, S, H), dtype=jnp.float32)
    # Deterministic synthetic parameters (torch Linear storage layout [H_out, H_in]).
    weight = jax.random.normal(k_w, (H, H), dtype=jnp.float32) * (1.0 / H ** 0.5)
    bias = jax.random.normal(k_b, (H,), dtype=jnp.float32) * 0.01

    out = qt_self_output(hidden_states, input_tensor, weight, bias)
    jax.block_until_ready(out)

    # Reference: torch Linear + dropout(eval, identity) + residual.
    ref = hidden_states @ weight.T + bias + input_tensor
    assert out.shape == ref.shape, "shape mismatch vs reference"
    assert jnp.allclose(out, ref, atol=1e-5, rtol=1e-5), "mismatch vs reference"

    print("KERNEL_OK")
</pallas_src>

<mosaic_0001>
module attributes {stable_mosaic.version = 11 : i64} {
  func.func @_self_output_resident_kernel(%arg0: i32, %arg1: memref<16x128xf32, #tpu.memory_space<vmem>>, %arg2: memref<128x128xf32, #tpu.memory_space<vmem>>, %arg3: memref<1x128xf32, #tpu.memory_space<vmem>>, %arg4: memref<16x128xf32, #tpu.memory_space<vmem>>, %arg5: memref<16x128xf32, #tpu.memory_space<vmem>>) attributes {dimension_semantics = [#tpu.dimension_semantics<parallel>], iteration_bounds = array<i64: 1>, scalar_prefetch = 0 : i64, scratch_operands = 0 : i64, tpu.core_type = #tpu.core_type<tc>, window_params = [{transform_indices = @transform_0, window_bounds = array<i64: 16, 128>}, {pipeline_mode = #tpu.pipeline_mode<synchronous>, transform_indices = @transform_1, window_bounds = array<i64: 128, 128>}, {pipeline_mode = #tpu.pipeline_mode<synchronous>, transform_indices = @transform_2, window_bounds = array<i64: 1, 128>}, {transform_indices = @transform_3, window_bounds = array<i64: 16, 128>}, {transform_indices = @transform_4, window_bounds = array<i64: 16, 128>}]} {
    %c0 = arith.constant 0 : index
    %c0_0 = arith.constant 0 : index
    %0 = vector.load %arg1[%c0, %c0_0] : memref<16x128xf32, #tpu.memory_space<vmem>>, vector<16x128xf32>
    %c0_1 = arith.constant 0 : index
    %c0_2 = arith.constant 0 : index
    %1 = vector.load %arg2[%c0_1, %c0_2] : memref<128x128xf32, #tpu.memory_space<vmem>>, vector<128x128xf32>
    %cst = arith.constant dense<0.000000e+00> : vector<16x128xf32>
    %2 = tpu.matmul %0, %1, %cst {dimension_numbers = #tpu.dot_dimension_numbers<[1], [0], [0], [1], [0, 0, 1, 1], [], []>} : vector<16x128xf32>, vector<128x128xf32>, vector<16x128xf32> -> vector<16x128xf32>
    %c0_3 = arith.constant 0 : index
    %c0_4 = arith.constant 0 : index
    %3 = vector.load %arg3[%c0_3, %c0_4] : memref<1x128xf32, #tpu.memory_space<vmem>>, vector<1x128xf32>
    %4 = vector.broadcast %3 : vector<1x128xf32> to vector<16x128xf32>
    %5 = arith.addf %2, %4 : vector<16x128xf32>
    %c0_5 = arith.constant 0 : index
    %c0_6 = arith.constant 0 : index
    %6 = vector.load %arg4[%c0_5, %c0_6] : memref<16x128xf32, #tpu.memory_space<vmem>>, vector<16x128xf32>
    %7 = arith.addf %5, %6 : vector<16x128xf32>
    %c0_7 = arith.constant 0 : index
    %c0_8 = arith.constant 0 : index
    %8 = vector.load %arg5[%c0_7, %c0_8] : memref<16x128xf32, #tpu.memory_space<vmem>>, vector<16x128xf32>
    tpu.vector_store %arg5[%c0_7, %c0_8], %7 {strides = array<i32>} : memref<16x128xf32, #tpu.memory_space<vmem>>, vector<16x128xf32>,
    return
  }
  func.func @transform_0(%arg0: i32) -> (i32, i32) {
    %c0_i32 = arith.constant 0 : i32
    %c0_i32_0 = arith.constant 0 : i32
    return %arg0, %c0_i32 : i32, i32
  }
  func.func @transform_1(%arg0: i32) -> (i32, i32) {
    %c0_i32 = arith.constant 0 : i32
    %c0_i32_0 = arith.constant 0 : i32
    %c0_i32_1 = arith.constant 0 : i32
    return %c0_i32, %c0_i32_0 : i32, i32
  }
  func.func @transform_2(%arg0: i32) -> (i32, i32) {
    %c0_i32 = arith.constant 0 : i32
    %c0_i32_0 = arith.constant 0 : i32
    %c0_i32_1 = arith.constant 0 : i32
    return %c0_i32, %c0_i32_0 : i32, i32
  }
  func.func @transform_3(%arg0: i32) -> (i32, i32) {
    %c0_i32 = arith.constant 0 : i32
    %c0_i32_0 = arith.constant 0 : i32
    return %arg0, %c0_i32 : i32, i32
  }
  func.func @transform_4(%arg0: i32) -> (i32, i32) {
    %c0_i32 = arith.constant 0 : i32
    %c0_i32_0 = arith.constant 0 : i32
    return %arg0, %c0_i32 : i32, i32
  }
}

</mosaic_0001>

<bundles_post_ra>
// kernel: tpu_custom_call.1
= control target key start
LH: loop header
LB: loop body
LE: loop exit
PB: predicated region body
PF: predicated region fallthrough
CT: control target
= control target key end

     0   :  { %9 = vsyncpa [#allocation3], 0  ;;  %s470_s0 = inlined_call_operand.hbm [shape: f32[16,128], index: 0, kind: input, shape index: {}]   ;;  %s471_s1 = inlined_call_operand.hbm [shape: f32[128,128], index: 1, kind: input, shape index: {}]   ;;  %s472_s2 = inlined_call_operand.vmem [shape: f32[1,128], index: 2, kind: input, shape index: {}]   ;;  %s473_s3 = inlined_call_operand.hbm [shape: f32[16,128], index: 3, kind: input, shape index: {}]   ;;  %s474_s4 = inlined_call_operand.hbm [shape: f32[16,128], index: 4, kind: output, shape index: {}]  }
   0x1   :  { %10 = vsyncpa [#allocation6], 0 }
   0x2   :  { %11 = vsyncpa [#allocation4], 0  ;;  %s369_s15 = smov [#allocation5]   ;;  %s370_s17 = smov [#allocation2]  }
   0x3   :  { %s29_s16 = sshll.u32 %s369_s15, 4  ;;  %s17_s18 = sshll.u32 %s370_s17, 4  ;;  %s30_s16 = int_to_ptr.vmem [resolvable:$true] %s29_s16  ;;  %s400_s18 = int_to_ptr.vmem [resolvable:$true] %s17_s18 }
   0x4   :  { %s275_s21 = scalar_lea.hbm %s471_s1, 2048 }
   0x5   :  { %p276_p0 = scmp.ne.s32.totalorder %s471_s1, %s275_s21  ;;  %p279_p1 = scmp.lt.u32.totalorder %s275_s21, %s471_s1 }
   0x7   :  { %p281_p2 = pnand %p279_p1, %p276_p0 }
   0x9   :  { %284 = shalt.err (!%p281_p2)
}
   0xa   :  { %s285_s26 = scalar_lea.vmem %s30_s16, 2048  ;;  %p290_p4 = scmp.lt.s32.totalorder %s30_s16, %s30_s16 }
   0xb   :  { %p286_p3 = scmp.ne.s32.totalorder %s30_s16, %s285_s26  ;;  %p291_p5 = scmp.lt.s32.totalorder %s285_s26, %s285_s26 }
   0xd   :  { %p292_p6 = por %p291_p5, %p290_p4 }
   0xf   :  { %p293_p7 = pnand %p292_p6, %p286_p3 }
  0x11   :  { %296 = shalt.err (!%p293_p7)
}
  0x12   :  { %s371_s27 = smov 128   ;;  %s372_s28 = smov 8  }
  0x13   :  { %35 = dma.hbm_to_vmem [thread:$0]  %s471_s1, 2048, %s30_s16, [#allocation6], %s371_s27, %s371_s27, %s372_s28  }
  0x14   :  { %s297_s7 = scalar_lea.hbm %s470_s0, 256 }
  0x15   :  { %p298_p8 = scmp.ne.s32.totalorder %s470_s0, %s297_s7  ;;  %p301_p9 = scmp.lt.u32.totalorder %s297_s7, %s470_s0 }
  0x17   :  { %p303_p10 = pnand %p301_p9, %p298_p8 }
  0x19   :  { %306 = shalt.err (!%p303_p10)
}
  0x1a   :  { %s307_s12 = scalar_lea.vmem %s400_s18, 256  ;;  %p312_p12 = scmp.lt.s32.totalorder %s400_s18, %s400_s18 }
  0x1b   :  { %p308_p11 = scmp.ne.s32.totalorder %s400_s18, %s307_s12  ;;  %p313_p13 = scmp.lt.s32.totalorder %s307_s12, %s307_s12 }
  0x1d   :  { %p314_p0 = por %p313_p13, %p312_p12 }
  0x1f   :  { %p315_p1 = pnand %p314_p0, %p308_p11 }
  0x21   :  { %318 = shalt.err (!%p315_p1)
}
  0x22   :  { %23 = dma.hbm_to_vmem [thread:$0]  %s470_s0, 256, %s400_s18, [#allocation3], %s371_s27, %s371_s27, %s372_s28  }
  0x23   :  { %s373_s14 = smov [#allocation7]   ;;  %s319_s19 = scalar_lea.hbm %s473_s3, 256 }
  0x24   :  { %s43_s15 = sshll.u32 %s373_s14, 4  ;;  %p320_p2 = scmp.ne.s32.totalorder %s473_s3, %s319_s19  ;;  %s44_s15 = int_to_ptr.vmem [resolvable:$true] %s43_s15 }
  0x25   :  { %p323_p3 = scmp.lt.u32.totalorder %s319_s19, %s473_s3 }
  0x27   :  { %p325_p4 = pnand %p323_p3, %p320_p2 }
  0x29   :  { %328 = shalt.err (!%p325_p4)
}
  0x2a   :  { %s329_s24 = scalar_lea.vmem %s44_s15, 256  ;;  %p334_p6 = scmp.lt.s32.totalorder %s44_s15, %s44_s15 }
  0x2b   :  { %p330_p5 = scmp.ne.s32.totalorder %s44_s15, %s329_s24  ;;  %p335_p7 = scmp.lt.s32.totalorder %s329_s24, %s329_s24 }
  0x2d   :  { %p336_p8 = por %p335_p7, %p334_p6 }
  0x2f   :  { %p337_p9 = pnand %p336_p8, %p330_p5 }
  0x31   :  { %340 = shalt.err (!%p337_p9)
}
  0x32   :  { %49 = dma.hbm_to_vmem [thread:$0]  %s473_s3, 256, %s44_s15, [#allocation6], %s371_s27, %s371_s27, %s372_s28  }
  0x33   :  { %363 = dma.done.wait [#allocation3], 256  }
  0x34   :  { %364 = vsyncadd [#allocation3], 4294967040 }
  0x35   :  { %365 = dma.done.wait [#allocation6], 2304  }
  0x36   :  { %366 = vsyncadd [#allocation6], 4294964992  ;;  %v61_v0 = vld [vmem:[#allocation5] sm:$0xff]  ;;  %v62_v1 = vld [vmem:[#allocation5 + $0x8] sm:$0xff]  ;;  %s374_s26 = smov [#allocation8]  }
  0x37   :  { %v63_v2 = vld [vmem:[#allocation5 + $0x10] sm:$0xff]  ;;  %v237_v3 = vpack.c.bf16 %v62_v1, %v61_v0  ;;  %v64_v4 = vld [vmem:[#allocation5 + $0x18] sm:$0xff]  ;;  %v65_v6 = vld [vmem:[#allocation5 + $0x20] sm:$0xff]  ;;  %s170_s29 = sshll.u32 %s374_s26, 4  ;;  %s171_s29 = int_to_ptr.vmem [resolvable:$true] %s170_s29 }
  0x38   :  { %v241_v5 = vpack.c.bf16 %v64_v4, %v63_v2  ;;  %v66_v7 = vld [vmem:[#allocation5 + $0x28] sm:$0xff]  ;;  %v59_v9 = vld [vmem:[#allocation2] sm:$0xff]  ;;  %v68_v11 = vld [vmem:[#allocation5 + $0x38] sm:$0xff]  ;;  %s341_s30 = scalar_lea.vmem %s171_s29, 256  ;;  %p346_p11 = scmp.lt.s32.totalorder %s171_s29, %s171_s29 }
  0x39   :  { %238 = vmatprep.subr.bf16.mxu0 %v237_v3  ;;  %v245_v8 = vpack.c.bf16 %v66_v7, %v65_v6  ;;  %v67_v10 = vld [vmem:[#allocation5 + $0x30] sm:$0xff]  ;;  %234 = vmatprep.mubr.f32.mxu0 %v59_v9  ;;  %v69_v13 = vld [vmem:[#allocation5 + $0x40] sm:$0xff]  ;;  %v70_v14 = vld [vmem:[#allocation5 + $0x48] sm:$0xff]  ;;  %p342_p10 = scmp.ne.s32.totalorder %s171_s29, %s341_s30  ;;  %p347_p12 = scmp.lt.s32.totalorder %s341_s30, %s341_s30 }
  0x3a   :  { %240 = vmatpush3.bf16.msra.mxu0 %v237_v3  ;;  %v249_v12 = vpack.c.bf16 %v68_v11, %v67_v10  ;;  %v253_v15 = vpack.c.bf16 %v70_v14, %v69_v13  ;;  %v71_v16 = vld [vmem:[#allocation5 + $0x50] sm:$0xff]  ;;  %v72_v17 = vld [vmem:[#allocation5 + $0x58] sm:$0xff]  ;;  %v73_v19 = vld [vmem:[#allocation5 + $0x60] sm:$0xff] }
  0x3b   :  { %242 = vmatprep.subr.bf16.mxu0 %v241_v5  ;;  %v257_v18 = vpack.c.bf16 %v72_v17, %v71_v16  ;;  %v74_v20 = vld [vmem:[#allocation5 + $0x68] sm:$0xff]  ;;  %v75_v22 = vld [vmem:[#allocation5 + $0x70] sm:$0xff]  ;;  %v76_v23 = vld [vmem:[#allocation5 + $0x78] sm:$0xff]  ;;  %p348_p13 = por %p347_p12, %p346_p11 }
  0x3c   :  { %v261_v21 = vpack.c.bf16 %v74_v20, %v73_v19  ;;  %v265_v24 = vpack.c.bf16 %v76_v23, %v75_v22  ;;  %v60_v25 = vld [vmem:[#allocation2 + $0x8] sm:$0xff]  ;;  %v183_v26 = vld [vmem:[%s472_s2] ss:$0 sm:$0xff]  ;;  %v160_v28 = vld [vmem:[#allocation7 + $0x8] sm:$0xff] }
  0x3d   :  { %v159_v31 = vld [vmem:[#allocation7] sm:$0xff]  ;;  %p349_p0 = pnand %p348_p13, %p342_p10 }
  0x3e   :  { %244 = vmatpush3.bf16.msra.mxu0 %v241_v5 }
  0x3f   :  { %246 = vmatprep.subr.bf16.mxu0 %v245_v8 }
  0x42   :  { %248 = vmatpush3.bf16.msra.mxu0 %v245_v8 }
  0x43   :  { %250 = vmatprep.subr.bf16.mxu0 %v249_v12 }
  0x46   :  { %252 = vmatpush3.bf16.msra.mxu0 %v249_v12 }
  0x47   :  { %254 = vmatprep.subr.bf16.mxu0 %v253_v15 }
  0x4a   :  { %256 = vmatpush3.bf16.msra.mxu0 %v253_v15 }
  0x4b   :  { %258 = vmatprep.subr.bf16.mxu0 %v257_v18 }
  0x4e   :  { %260 = vmatpush3.bf16.msra.mxu0 %v257_v18 }
  0x4f   :  { %262 = vmatprep.subr.bf16.mxu0 %v261_v21 }
  0x52   :  { %264 = vmatpush3.bf16.msra.mxu0 %v261_v21 }
  0x53   :  { %266 = vmatprep.subr.bf16.mxu0 %v265_v24 }
  0x56   :  { %268 = vmatpush3.bf16.msra.mxu0 %v265_v24 }
  0x59   :  { %235 = vmatmul.mubr.f32.vlgmr.msra.gmra.mrb[0].mxu0 %v60_v25 }
 0x12c   :  { %v236_v27 = vpop.f32.mrb[0].mxu0 }
 0x12d   :  { %v156_v29 = vadd.f32 %v236_v27, %v183_v26  ;;  %v150_v30 = vpop.f32.mrb[1].mxu0 }
 0x12e   :  { %v151_v32 = vadd.f32 %v183_v26, %v150_v30 }
 0x12f   :  { %v162_v33 = vadd.f32 %v160_v28, %v156_v29 }
 0x130   :  { %v161_v34 = vadd.f32 %v159_v31, %v151_v32 }
 0x131   :  { %164 = vst [vmem:[#allocation8 + $0x8] sm:$0xff] %v162_v33 }
 0x132   :  { %163 = vst [vmem:[#allocation8] sm:$0xff] %v161_v34 }
 0x133   :  { %352 = shalt.err (!%p349_p0)
}
 0x134   :  { %s353_s6 = scalar_lea.hbm %s474_s4, 256 }
 0x135   :  { %p354_p1 = scmp.ne.s32.totalorder %s474_s4, %s353_s6  ;;  %p357_p2 = scmp.lt.u32.totalorder %s353_s6, %s474_s4 }
 0x137   :  { %p359_p3 = pnand %p357_p2, %p354_p1 }
 0x139   :  { %362 = shalt.err (!%p359_p3)
}
 0x13a   :  { %176 = dma.vmem_to_hbm [thread:$0]  %s171_s29, 256, %s474_s4, [#allocation4], %s371_s27, %s371_s27, %s372_s28  }
 0x13b   :  { %367 = dma.done.wait [#allocation4], 256  }
 0x13c   :  { %368 = vsyncadd [#allocation4], 4294967040 }
 0x13d   :  { %180 = vsyncpa [#allocation3], 1 }
 0x13e   :  { %181 = vsyncpa [#allocation6], 1 }
 0x13f   :  { %182 = vsyncpa [#allocation4], 1 }

</bundles_post_ra>
